<compile_context>
chip_gen: v7x
topology: tpu7x:2x2x1
jax: 0.10.0
libtpu: 0.0.40
codegen_flags: <defaults>
</compile_context>

<pallas_src>
import functools

import jax
import jax.numpy as jnp
from jax.experimental import pallas as pl
from jax.experimental.pallas import tpu as pltpu


def _cost_critic_kernel(x_ref, w1_ref, b1_ref, wv_ref, bv_ref, v_ref):
    """One batch tile.

    x_ref  : (TB, D)  state tile, batch on the sublane axis (f32 or bf16)
    w1_ref : (F1, D)  fc1.weight (PyTorch layout), VMEM-resident across the grid
    b1_ref : (F1, 1)  fc1.bias as a column (f32)
    wv_ref : (F1, 1)  v.weight as a column (f32)
    bv_ref : (1, 1)   v.bias, SMEM scalar (f32)
    v_ref  : (1, TB)  value output, batch on the lane axis (f32)
    """
    # fc1: single MXU matmul, contracting D with D (rhs-transposed operand is free
    # on the MXU), f32 accumulation.  Result is (F1, TB): batch stays on lanes.
    h = jax.lax.dot_general(
        w1_ref[...], x_ref[...],
        dimension_numbers=(((1,), (1,)), ((), ())),
        preferred_element_type=jnp.float32)                    # (F1, TB) f32
    # bias + ReLU on the VPU, in f32 (v5e has no bf16 VPU).
    h = jnp.maximum(h + b1_ref[...], 0.0)
    # Value head: N=1 matmul replaced by VPU multiply + sublane (XLU) reduce.
    v = jnp.sum(h * wv_ref[...], axis=0, keepdims=True)        # (1, TB) lane-dense
    v_ref[...] = v + bv_ref[0, 0]


def _round_up(x, m):
    return ((x + m - 1) // m) * m


@functools.partial(jax.jit, static_argnames=("block_b", "compute_dtype"))
def cost_critic_forward(state, w1, b1, wv, bv, *,
                        block_b=2048, compute_dtype=jnp.bfloat16):
    """state: (B, D) f32.  Parameters in PyTorch layout:
       w1: (F1, D) fc1.weight, b1: (F1,) fc1.bias,
       wv: (1, F1) v.weight,   bv: (1,)  v.bias.
       Returns v: (B, 1) f32.  block_b must be a multiple of 128."""
    B, D = state.shape
    F1 = w1.shape[0]

    # Biggest lane-aligned batch tile up to block_b; the grid covers the rest.
    # Partial last tiles are handled by Pallas block padding (see header note).
    TB = min(block_b, _round_up(B, 128))
    nb = pl.cdiv(B, TB)

    # Only pre-kernel ops: dtype casts of the MXU operands (no transpose, no pad).
    x = state.astype(compute_dtype)                             # (B, D)
    w1_c = w1.astype(compute_dtype)                             # (F1, D)
    b1_c = b1.reshape(F1, 1).astype(jnp.float32)                # (F1, 1)
    wv_c = wv.reshape(F1, 1).astype(jnp.float32)                # (F1, 1)
    bv_s = bv.reshape(1, 1).astype(jnp.float32)                 # (1, 1) -> SMEM

    out = pl.pallas_call(
        _cost_critic_kernel,
        out_shape=jax.ShapeDtypeStruct((1, B), jnp.float32),
        grid=(nb,),
        in_specs=[
            pl.BlockSpec((TB, D), lambda i: (i, 0)),            # state tile (pipelined)
            pl.BlockSpec((F1, D), lambda i: (0, 0)),            # W1: VMEM-resident
            pl.BlockSpec((F1, 1), lambda i: (0, 0)),            # b1: VMEM-resident
            pl.BlockSpec((F1, 1), lambda i: (0, 0)),            # wv: VMEM-resident
            pl.BlockSpec(memory_space=pltpu.MemorySpace.SMEM),  # bv: SMEM scalar
        ],
        out_specs=pl.BlockSpec((1, TB), lambda i: (0, i)),      # lane-dense output
        compiler_params=pltpu.CompilerParams(
            dimension_semantics=("parallel",),                  # shards over v7x's 2 TCs
        ),
    )(x, w1_c, b1_c, wv_c, bv_s)

    return out[0].reshape(B, 1)


def init_params(key, input_dim, fc1_dims, fc2_dims):
    """PyTorch-style (Kaiming-uniform) init for the layers used by forward().
    NOTE: forward() feeds fc1's output straight into v (skipping fc2/pi); this only
    shape-checks because fc1_dims == fc2_dims in the original module's defaults."""
    assert fc1_dims == fc2_dims
    k1, k2, k3, k4 = jax.random.split(key, 4)
    bound1 = 1.0 / jnp.sqrt(jnp.float32(input_dim))
    w1 = jax.random.uniform(k1, (fc1_dims, input_dim), jnp.float32, -bound1, bound1)
    b1 = jax.random.uniform(k2, (fc1_dims,), jnp.float32, -bound1, bound1)
    boundv = 1.0 / jnp.sqrt(jnp.float32(fc2_dims))
    wv = jax.random.uniform(k3, (1, fc2_dims), jnp.float32, -boundv, boundv)
    bv = jax.random.uniform(k4, (1,), jnp.float32, -boundv, boundv)
    return w1, b1, wv, bv


if __name__ == "__main__":
    key = jax.random.PRNGKey(0)
    k_state, k_params = jax.random.split(key)

    batch = 200          # deliberately not a multiple of 128 (exercises partial tile)
    input_dim = 8
    fc1_dims = 64
    fc2_dims = 64
    n_actions = 4        # pi head exists in __init__ but is unused in forward

    state = jax.random.normal(k_state, (batch, input_dim), dtype=jnp.float32)
    w1, b1, wv, bv = init_params(k_params, input_dim, fc1_dims, fc2_dims)

    # Plain-JAX reference of the PyTorch forward.
    h_ref = jnp.maximum(state @ w1.T + b1[None, :], 0.0)
    v_ref = h_ref @ wv.T + bv[None, :]

    # f32 MXU-input path (bit-comparable with the reference).
    v = cost_critic_forward(state, w1, b1, wv, bv, compute_dtype=jnp.float32)
    jax.block_until_ready(v)
    assert v.shape == (batch, 1)
    assert jnp.allclose(v, v_ref, atol=1e-5, rtol=1e-5)

    # bf16 MXU-input path (default; f32 accumulation + f32 epilogue, all generations).
    v_bf16 = cost_critic_forward(state, w1, b1, wv, bv, compute_dtype=jnp.bfloat16)
    jax.block_until_ready(v_bf16)
    assert v_bf16.shape == (batch, 1)
    assert jnp.allclose(v_bf16, v_ref, atol=1e-1, rtol=1e-1)

    # TODO(synk): fc2/pi layers, Adam optimizer and save/load are host-side /
    # unused-in-forward and intentionally not translated.
    print("KERNEL_OK")
</pallas_src>

<mosaic_0001>
module attributes {stable_mosaic.version = 11 : i64} {
  func.func @_cost_critic_kernel(%arg0: i32, %arg1: memref<256x8xf32, #tpu.memory_space<vmem>>, %arg2: memref<64x8xf32, #tpu.memory_space<vmem>>, %arg3: memref<64x1xf32, #tpu.memory_space<vmem>>, %arg4: memref<64x1xf32, #tpu.memory_space<vmem>>, %arg5: memref<1x1xf32, #tpu.memory_space<smem>>, %arg6: memref<1x256xf32, #tpu.memory_space<vmem>>) attributes {dimension_semantics = [#tpu.dimension_semantics<parallel>], iteration_bounds = array<i64: 1>, scalar_prefetch = 0 : i64, scratch_operands = 0 : i64, tpu.core_type = #tpu.core_type<tc>, window_params = [{transform_indices = @transform_0, window_bounds = array<i64: 256, 8>}, {pipeline_mode = #tpu.pipeline_mode<synchronous>, transform_indices = @transform_1, window_bounds = array<i64: 64, 8>}, {pipeline_mode = #tpu.pipeline_mode<synchronous>, transform_indices = @transform_2, window_bounds = array<i64: 64, 1>}, {pipeline_mode = #tpu.pipeline_mode<synchronous>, transform_indices = @transform_3, window_bounds = array<i64: 64, 1>}, {transform_indices = @transform_4, window_bounds = array<i64: 1, 1>}, {transform_indices = @transform_5, window_bounds = array<i64: 1, 256>}]} {
    %c0 = arith.constant 0 : index
    %c0_0 = arith.constant 0 : index
    %0 = vector.load %arg2[%c0, %c0_0] : memref<64x8xf32, #tpu.memory_space<vmem>>, vector<64x8xf32>
    %c0_1 = arith.constant 0 : index
    %c0_2 = arith.constant 0 : index
    %1 = vector.load %arg1[%c0_1, %c0_2] : memref<256x8xf32, #tpu.memory_space<vmem>>, vector<256x8xf32>
    %cst = arith.constant dense<0.000000e+00> : vector<64x256xf32>
    %2 = tpu.matmul %0, %1, %cst {dimension_numbers = #tpu.dot_dimension_numbers<[1], [1], [0], [0], [0, 0, 1, 0], [], []>} : vector<64x8xf32>, vector<256x8xf32>, vector<64x256xf32> -> vector<64x256xf32>
    %c0_3 = arith.constant 0 : index
    %c0_4 = arith.constant 0 : index
    %3 = vector.load %arg3[%c0_3, %c0_4] : memref<64x1xf32, #tpu.memory_space<vmem>>, vector<64x1xf32>
    %4 = vector.broadcast %3 : vector<64x1xf32> to vector<64x256xf32>
    %5 = arith.addf %2, %4 : vector<64x256xf32>
    %cst_5 = arith.constant 0.000000e+00 : f32
    %6 = vector.broadcast %cst_5 : f32 to vector<64x256xf32>
    %7 = arith.maximumf %5, %6 : vector<64x256xf32>
    %c0_6 = arith.constant 0 : index
    %c0_7 = arith.constant 0 : index
    %8 = vector.load %arg4[%c0_6, %c0_7] : memref<64x1xf32, #tpu.memory_space<vmem>>, vector<64x1xf32>
    %9 = vector.broadcast %8 : vector<64x1xf32> to vector<64x256xf32>
    %10 = arith.mulf %7, %9 : vector<64x256xf32>
    %cst_8 = arith.constant dense<0.000000e+00> : vector<256xf32>
    %11 = vector.multi_reduction <add>, %10, %cst_8 [0] : vector<64x256xf32> to vector<256xf32>
    %12 = vector.shape_cast %11 : vector<256xf32> to vector<1x256xf32>
    %c0_9 = arith.constant 0 : index
    %c0_10 = arith.constant 0 : index
    %13 = memref.load %arg5[%c0_9, %c0_10] : memref<1x1xf32, #tpu.memory_space<smem>>
    %14 = vector.broadcast %13 : f32 to vector<1x256xf32>
    %15 = arith.addf %12, %14 : vector<1x256xf32>
    %c0_11 = arith.constant 0 : index
    %c0_12 = arith.constant 0 : index
    %16 = vector.load %arg6[%c0_11, %c0_12] : memref<1x256xf32, #tpu.memory_space<vmem>>, vector<1x256xf32>
    tpu.vector_store %arg6[%c0_11, %c0_12], %15 {strides = array<i32>} : memref<1x256xf32, #tpu.memory_space<vmem>>, vector<1x256xf32>,
    return
  }
  func.func @transform_0(%arg0: i32) -> (i32, i32) {
    %c0_i32 = arith.constant 0 : i32
    %c0_i32_0 = arith.constant 0 : i32
    return %arg0, %c0_i32 : i32, i32
  }
  func.func @transform_1(%arg0: i32) -> (i32, i32) {
    %c0_i32 = arith.constant 0 : i32
    %c0_i32_0 = arith.constant 0 : i32
    %c0_i32_1 = arith.constant 0 : i32
    return %c0_i32, %c0_i32_0 : i32, i32
  }
  func.func @transform_2(%arg0: i32) -> (i32, i32) {
    %c0_i32 = arith.constant 0 : i32
    %c0_i32_0 = arith.constant 0 : i32
    %c0_i32_1 = arith.constant 0 : i32
    return %c0_i32, %c0_i32_0 : i32, i32
  }
  func.func @transform_3(%arg0: i32) -> (i32, i32) {
    %c0_i32 = arith.constant 0 : i32
    %c0_i32_0 = arith.constant 0 : i32
    %c0_i32_1 = arith.constant 0 : i32
    return %c0_i32, %c0_i32_0 : i32, i32
  }
  func.func @transform_4(%arg0: i32) -> (i32, i32) {
    %c0_i32 = arith.constant 0 : i32
    %c0_i32_0 = arith.constant 0 : i32
    %c0_i32_1 = arith.constant 0 : i32
    return %c0_i32, %c0_i32_0 : i32, i32
  }
  func.func @transform_5(%arg0: i32) -> (i32, i32) {
    %c0_i32 = arith.constant 0 : i32
    %c0_i32_0 = arith.constant 0 : i32
    return %c0_i32, %arg0 : i32, i32
  }
}

</mosaic_0001>

<bundles_post_ra>
// kernel: cost_critic_forward.1
= control target key start
LH: loop header
LB: loop body
LE: loop exit
PB: predicated region body
PF: predicated region fallthrough
CT: control target
= control target key end

     0   :  { %vm110_vm0 = vcmask 64512   ;;  %v672_v7 = vmov 0   ;;  %s982_s0 = inlined_call_operand.vmem [shape: f32[200,8], index: 0, kind: input, shape index: {}]   ;;  %s983_s1 = inlined_call_operand.vmem [shape: f32[64,8], index: 1, kind: input, shape index: {}]   ;;  %s984_s2 = inlined_call_operand.vmem [shape: f32[64,1], index: 2, kind: input, shape index: {}]   ;;  %s985_s3 = inlined_call_operand.vmem [shape: f32[64,1], index: 3, kind: input, shape index: {}]   ;;  %s986_s4 = inlined_call_operand.<no memory space> [shape: f32[1,1], index: 4, kind: input, shape index: {}]   ;;  %s987_s5 = inlined_call_operand.hbm [shape: f32[1,200], index: 5, kind: output, shape index: {}]  }
   0x1   :  { %v46_v0 = vld [vmem:[%s982_s0 + $0x80] sm:$0xff]  ;;  %v47_v1 = vld [vmem:[%s982_s0 + $0x88] sm:$0xff]  ;;  %vm716_vm1 = vmpackc.low %vm110_vm0, %vm110_vm0  ;;  %646 = vset.pattern.permute.xlu0 %v672_v7  ;;  %647 = vset.pattern.permute.xlu1 %v672_v7 }
   0x2   :  { %v30_v2 = vld [vmem:[%s982_s0] sm:$0xff]  ;;  %v579_v3 = vpack.c.bf16 %v47_v1, %v46_v0  ;;  %v31_v5 = vld [vmem:[%s982_s0 + $0x8] sm:$0xff]  ;;  %v48_v6 = vld [vmem:[%s982_s0 + $0x90] sm:$0xff] }
   0x3   :  { %v582_v8 = vpack.c.bf16 %v31_v5, %v30_v2  ;;  %v49_v9 = vld [vmem:[%s982_s0 + $0x98] sm:$0xff]  ;;  %v32_v11 = vld [vmem:[%s982_s0 + $0x10] sm:$0xff]  ;;  %v50_v13 = vld [vmem:[%s982_s0 + $0xa0] sm:$0xff] }
   0x4   :  { %581 = vmatprep.subr.msk.bf16.mxu0 %vm716_vm1, %v579_v3  ;;  %627 = vmatprep.subr.msk.bf16.mxu1 %vm716_vm1, %v579_v3  ;;  %v585_v10 = vpack.c.bf16 %v49_v9, %v48_v6  ;;  %v33_v12 = vld [vmem:[%s982_s0 + $0x18] sm:$0xff]  ;;  %v51_v14 = vld [vmem:[%s982_s0 + $0xa8] sm:$0xff]  ;;  %v756_v17 = vld [vmem:[%s983_s1] sm:$0xff] }
   0x5   :  { %584 = vmatpush3.bf16.xpose.msk.msra.mxu0 %vm716_vm1, %v582_v8  ;;  %635 = vmatpush3.bf16.xpose.msk.msra.mxu1 %vm716_vm1, %v582_v8  ;;  %v588_v15 = vpack.c.bf16 %v33_v12, %v32_v11  ;;  %v591_v16 = vpack.c.bf16 %v51_v14, %v50_v13  ;;  %v761_v18 = vld [vmem:[%s983_s1 + $0x20] sm:$0xff]  ;;  %v35_v20 = vld [vmem:[%s982_s0 + $0x28] sm:$0xff]  ;;  %v52_v22 = vld [vmem:[%s982_s0 + $0xb0] sm:$0xff] }
   0x6   :  { %587 = vmatprep.subr.msk.bf16.mxu0 %vm716_vm1, %v585_v10  ;;  %628 = vmatprep.subr.msk.bf16.mxu1 %vm716_vm1, %v585_v10  ;;  %v34_v19 = vld [vmem:[%s982_s0 + $0x20] sm:$0xff]  ;;  %v53_v23 = vld [vmem:[%s982_s0 + $0xb8] sm:$0xff]  ;;  %v64_v24 = vld [vmem:[%s984_s2 + $0x10] sm:$0xff] }
   0x7   :  { %v62_v21 = vld [vmem:[%s984_s2] sm:$0xff]  ;;  %563 = vmatprep.mubr.msk.f32.mxu0 %vm110_vm0, %v756_v17  ;;  %571 = vmatprep.mubr.msk.f32.mxu1 %vm110_vm0, %v761_v18  ;;  %v594_v25 = vpack.c.bf16 %v35_v20, %v34_v19  ;;  %v63_v26 = vld [vmem:[%s984_s2 + $0x8] sm:$0xff]  ;;  %v65_v27 = vld [vmem:[%s984_s2 + $0x18] sm:$0xff]  ;;  %v597_v28 = vpack.c.bf16 %v53_v23, %v52_v22 }
   0x8   :  { %72 = vperm.xlu0 %646, %v62_v21   ;;  %82 = vperm.xlu1 %647, %v64_v24  }
   0xc   :  { %77 = vperm.xlu0 %646, %v63_v26   ;;  %87 = vperm.xlu1 %647, %v65_v27  }
   0xd   :  { %590 = vmatpush3.bf16.xpose.msk.msra.mxu0 %vm716_vm1, %v588_v15  ;;  %636 = vmatpush3.bf16.xpose.msk.msra.mxu1 %vm716_vm1, %v588_v15 }
   0xe   :  { %593 = vmatprep.subr.msk.bf16.mxu0 %vm716_vm1, %v591_v16  ;;  %629 = vmatprep.subr.msk.bf16.mxu1 %vm716_vm1, %v591_v16 }
   0xf   :  { %11 = vsyncpa [#allocation4], 0  ;;  %v360_v29 = vld [vmem:[%s985_s3] sm:$0xff]  ;;  %v361_v30 = vld [vmem:[%s985_s3 + $0x8] sm:$0xff]  ;;  %s674_s27 = smov [#allocation3]  }
  0x10   :  { %v36_v31 = vld [vmem:[%s982_s0 + $0x30] sm:$0xff]  ;;  %v37_v32 = vld [vmem:[%s982_s0 + $0x38] sm:$0xff]  ;;  %v54_v33 = vld [vmem:[%s982_s0 + $0xc0] sm:$0xff]  ;;  %370 = vperm.xlu0 %646, %v360_v29   ;;  %375 = vperm.xlu1 %647, %v361_v30   ;;  %s483_s28 = sshll.u32 %s674_s27, 4  ;;  %s484_s28 = int_to_ptr.vmem [resolvable:$true] %s483_s28 }
  0x11   :  { %v55_v34 = vld [vmem:[%s982_s0 + $0xc8] sm:$0xff]  ;;  %v600_v35 = vpack.c.bf16 %v37_v32, %v36_v31  ;;  %v66_v36 = vld [vmem:[%s984_s2 + $0x20] sm:$0xff]  ;;  %v362_v37 = vld [vmem:[%s985_s3 + $0x10] sm:$0xff]  ;;  %s648_s29 = scalar_lea.vmem %s484_s28, 32  ;;  %p653_p1 = scmp.lt.s32.totalorder %s484_s28, %s484_s28 }
  0x12   :  { %v603_v38 = vpack.c.bf16 %v55_v34, %v54_v33  ;;  %v67_v39 = vld [vmem:[%s984_s2 + $0x28] sm:$0xff]  ;;  %v363_v40 = vld [vmem:[%s985_s3 + $0x18] sm:$0xff]  ;;  %v38_v41 = vld [vmem:[%s982_s0 + $0x40] sm:$0xff]  ;;  %p649_p0 = scmp.ne.s32.totalorder %s484_s28, %s648_s29  ;;  %p654_p2 = scmp.lt.s32.totalorder %s648_s29, %s648_s29 }
  0x13   :  { %v39_v42 = vld [vmem:[%s982_s0 + $0x48] sm:$0xff]  ;;  %v56_v43 = vld [vmem:[%s982_s0 + $0xd0] sm:$0xff]  ;;  %v57_v44 = vld [vmem:[%s982_s0 + $0xd8] sm:$0xff] }
  0x14   :  { %92 = vperm.xlu0 %646, %v66_v36   ;;  %380 = vperm.xlu1 %647, %v362_v37   ;;  %v606_v45 = vpack.c.bf16 %v39_v42, %v38_v41  ;;  %v68_v46 = vld [vmem:[%s984_s2 + $0x30] sm:$0xff]  ;;  %v364_v47 = vld [vmem:[%s985_s3 + $0x20] sm:$0xff]  ;;  %v609_v48 = vpack.c.bf16 %v57_v44, %v56_v43  ;;  %v69_v49 = vld [vmem:[%s984_s2 + $0x38] sm:$0xff]  ;;  %p655_p3 = por %p654_p2, %p653_p1 }
  0x15   :  { %596 = vmatpush3.bf16.xpose.msk.msra.mxu0 %vm716_vm1, %v594_v25  ;;  %637 = vmatpush3.bf16.xpose.msk.msra.mxu1 %vm716_vm1, %v594_v25  ;;  %v365_v50 = vld [vmem:[%s985_s3 + $0x28] sm:$0xff]  ;;  %v40_v51 = vld [vmem:[%s982_s0 + $0x50] sm:$0xff]  ;;  %v41_v52 = vld [vmem:[%s982_s0 + $0x58] sm:$0xff] }
  0x16   :  { %599 = vmatprep.subr.msk.bf16.mxu0 %vm716_vm1, %v597_v28  ;;  %630 = vmatprep.subr.msk.bf16.mxu1 %vm716_vm1, %v597_v28  ;;  %v58_v53 = vld [vmem:[%s982_s0 + $0xe0] sm:$0xff]  ;;  %v59_v54 = vld [vmem:[%s982_s0 + $0xe8] sm:$0xff]  ;;  %v612_v55 = vpack.c.bf16 %v41_v52, %v40_v51  ;;  %v366_v56 = vld [vmem:[%s985_s3 + $0x30] sm:$0xff]  ;;  %p656_p4 = pnand %p655_p3, %p649_p0 }
  0x17   :  { %v367_v57 = vld [vmem:[%s985_s3 + $0x38] sm:$0xff]  ;;  %v615_v58 = vpack.c.bf16 %v59_v54, %v58_v53  ;;  %v42_v59 = vld [vmem:[%s982_s0 + $0x60] sm:$0xff]  ;;  %v43_v60 = vld [vmem:[%s982_s0 + $0x68] sm:$0xff] }
  0x18   :  { %97 = vperm.xlu0 %646, %v67_v39   ;;  %385 = vperm.xlu1 %647, %v363_v40   ;;  %v60_v61 = vld [vmem:[%s982_s0 + $0xf0] sm:$0xff]  ;;  %v61_v62 = vld [vmem:[%s982_s0 + $0xf8] sm:$0xff]  ;;  %v618_v63 = vpack.c.bf16 %v43_v60, %v42_v59  ;;  %v23_v5 = vld [vmem:[%s983_s1 + $0x8] sm:$0xff] }
  0x19   :  { %v621_v0 = vpack.c.bf16 %v61_v62, %v60_v61  ;;  %v44_v1 = vld [vmem:[%s982_s0 + $0x70] sm:$0xff]  ;;  %v45_v2 = vld [vmem:[%s982_s0 + $0x78] sm:$0xff]  ;;  %v27_v6 = vld [vmem:[%s983_s1 + $0x28] sm:$0xff] }
  0x1a   :  { %v624_v3 = vpack.c.bf16 %v45_v2, %v44_v1  ;;  %v24_v4 = vld [vmem:[%s983_s1 + $0x10] sm:$0xff]  ;;  %v25_v8 = vld [vmem:[%s983_s1 + $0x18] sm:$0xff] }
  0x1b   :  { %v28_v7 = vld [vmem:[%s983_s1 + $0x30] sm:$0xff]  ;;  %v29_v9 = vld [vmem:[%s983_s1 + $0x38] sm:$0xff] }
  0x1c   :  { %102 = vperm.xlu0 %646, %v68_v46   ;;  %390 = vperm.xlu1 %647, %v364_v47  }
  0x1d   :  { %602 = vmatpush3.bf16.xpose.msk.msra.mxu0 %vm716_vm1, %v600_v35  ;;  %638 = vmatpush3.bf16.xpose.msk.msra.mxu1 %vm716_vm1, %v600_v35 }
  0x1e   :  { %605 = vmatprep.subr.msk.bf16.mxu0 %vm716_vm1, %v603_v38  ;;  %631 = vmatprep.subr.msk.bf16.mxu1 %vm716_vm1, %v603_v38 }
  0x20   :  { %107 = vperm.xlu0 %646, %v69_v49   ;;  %395 = vperm.xlu1 %647, %v365_v50  }
  0x24   :  { %400 = vperm.xlu0 %646, %v366_v56   ;;  %405 = vperm.xlu1 %647, %v367_v57  }
  0x25   :  { %608 = vmatpush3.bf16.xpose.msk.msra.mxu0 %vm716_vm1, %v606_v45  ;;  %639 = vmatpush3.bf16.xpose.msk.msra.mxu1 %vm716_vm1, %v606_v45 }
  0x26   :  { %611 = vmatprep.subr.msk.bf16.mxu0 %vm716_vm1, %v609_v48  ;;  %632 = vmatprep.subr.msk.bf16.mxu1 %vm716_vm1, %v609_v48 }
  0x2d   :  { %614 = vmatpush3.bf16.xpose.msk.msra.mxu0 %vm716_vm1, %v612_v55  ;;  %640 = vmatpush3.bf16.xpose.msk.msra.mxu1 %vm716_vm1, %v612_v55 }
  0x2e   :  { %617 = vmatprep.subr.msk.bf16.mxu0 %vm716_vm1, %v615_v58  ;;  %633 = vmatprep.subr.msk.bf16.mxu1 %vm716_vm1, %v615_v58 }
  0x35   :  { %620 = vmatpush3.bf16.xpose.msk.msra.mxu0 %vm716_vm1, %v618_v63  ;;  %641 = vmatpush3.bf16.xpose.msk.msra.mxu1 %vm716_vm1, %v618_v63 }
  0x36   :  { %623 = vmatprep.subr.msk.bf16.mxu0 %vm716_vm1, %v621_v0  ;;  %634 = vmatprep.subr.msk.bf16.mxu1 %vm716_vm1, %v621_v0 }
  0x3d   :  { %626 = vmatpush3.bf16.xpose.msk.msra.mxu0 %vm716_vm1, %v624_v3  ;;  %642 = vmatpush3.bf16.xpose.msk.msra.mxu1 %vm716_vm1, %v624_v3 }
  0x44   :  { %564 = vmatmul.mubr.msk.f32.vlgmr.msra.gmra.mrb[0].mxu0 %vm110_vm0, %v756_v17  ;;  %572 = vmatmul.mubr.msk.f32.vlgmr.msra.gmra.mrb[0].mxu1 %vm110_vm0, %v761_v18 }
  0x45   :  { %565 = vmatprep.mubr.msk.f32.mxu0 %vm110_vm0, %v23_v5  ;;  %573 = vmatprep.mubr.msk.f32.mxu1 %vm110_vm0, %v27_v6 }
  0x48   :  { %566 = vmatmul.mubr.msk.f32.gmra.mrb[2].mxu0 %vm110_vm0, %v23_v5  ;;  %574 = vmatmul.mubr.msk.f32.gmra.mrb[2].mxu1 %vm110_vm0, %v27_v6 }
  0x49   :  { %567 = vmatprep.mubr.msk.f32.mxu0 %vm110_vm0, %v24_v4  ;;  %575 = vmatprep.mubr.msk.f32.mxu1 %vm110_vm0, %v28_v7 }
  0x4c   :  { %568 = vmatmul.mubr.msk.f32.gmra.mrb[4].mxu0 %vm110_vm0, %v24_v4  ;;  %576 = vmatmul.mubr.msk.f32.gmra.mrb[4].mxu1 %vm110_vm0, %v28_v7 }
  0x4d   :  { %569 = vmatprep.mubr.msk.f32.mxu0 %vm110_vm0, %v25_v8  ;;  %577 = vmatprep.mubr.msk.f32.mxu1 %vm110_vm0, %v29_v9 }
  0x50   :  { %570 = vmatmul.mubr.msk.f32.gmra.mrb[6].mxu0 %vm110_vm0, %v25_v8  ;;  %578 = vmatmul.mubr.msk.f32.gmra.mrb[6].mxu1 %vm110_vm0, %v29_v9 }
  0x87   :  { %v73_v10 = vpop.permute.xlu0 %72  ;;  %v83_v11 = vpop.permute.xlu1 %82 }
  0x8b   :  { %v78_v12 = vpop.permute.xlu0 %77  ;;  %v88_v13 = vpop.permute.xlu1 %87 }
  0x8f   :  { %v371_v14 = vpop.permute.xlu0 %370  ;;  %v376_v15 = vpop.permute.xlu1 %375 }
  0x93   :  { %v93_v16 = vpop.permute.xlu0 %92  ;;  %v381_v17 = vpop.permute.xlu1 %380 }
  0x97   :  { %v98_v24 = vpop.permute.xlu0 %97  ;;  %v386_v25 = vpop.permute.xlu1 %385 }
  0x9b   :  { %v103_v43 = vpop.permute.xlu0 %102  ;;  %v391_v47 = vpop.permute.xlu1 %390 }
  0x9f   :  { %v108_v5 = vpop.permute.xlu0 %107 }
 0x117   :  { %v297_v18 = vpop.f32.mrb[0].mxu0  ;;  %v321_v19 = vpop.f32.mrb[0].mxu1 }
 0x118   :  { %v298_v20 = vadd.f32 %v297_v18, %v73_v10  ;;  %v299_v21 = vpop.f32.mrb[1].mxu0  ;;  %v323_v22 = vpop.f32.mrb[1].mxu1  ;;  %v322_v48 = vadd.f32 %v321_v19, %v93_v16 }
 0x119   :  { %v300_v23 = vadd.f32 %v299_v21, %v73_v10  ;;  %v324_v51 = vadd.f32 %v323_v22, %v93_v16 }
 0x11a   :  { %v344_v28 = vmax.f32 %v298_v20, 0.0  ;;  %v352_v0 = vmax.f32 %v322_v48, 0.0  ;;  %v460_v48 = vlaneseq }
 0x11b   :  { %v303_v26 = vpop.f32.mrb[2].mxu0  ;;  %v327_v27 = vpop.f32.mrb[2].mxu1  ;;  %v345_v32 = vmax.f32 %v300_v23, 0.0  ;;  %v353_v6 = vmax.f32 %v324_v51, 0.0 }
 0x11c   :  { %v304_v29 = vadd.f32 %v303_v26, %v78_v12  ;;  %v305_v30 = vpop.f32.mrb[3].mxu0  ;;  %v329_v31 = vpop.f32.mrb[3].mxu1  ;;  %v408_v38 = vmul.f32 %v371_v14, %v344_v28  ;;  %v328_v56 = vadd.f32 %v327_v27, %v98_v24  ;;  %v416_v18 = vmul.f32 %v391_v47, %v352_v0 }
 0x11d   :  { %v306_v33 = vadd.f32 %v305_v30, %v78_v12  ;;  %v409_v44 = vmul.f32 %v371_v14, %v345_v32  ;;  %v330_v61 = vadd.f32 %v329_v31, %v98_v24  ;;  %v396_v12 = vpop.permute.xlu1 %395  ;;  %v401_v26 = vpop.permute.xlu0 %400  ;;  %vm474_vm2 = vcmp.lt.s32.totalorder %v460_v48, 256 }
 0x11e   :  { %v346_v34 = vmax.f32 %v304_v29, 0.0  ;;  %v354_v9 = vmax.f32 %v328_v56, 0.0 }
 0x11f   :  { %v347_v35 = vmax.f32 %v306_v33, 0.0  ;;  %v309_v36 = vpop.f32.mrb[4].mxu0  ;;  %v333_v37 = vpop.f32.mrb[4].mxu1  ;;  %v355_v14 = vmax.f32 %v330_v61, 0.0 }
 0x120   :  { %v410_v39 = vmul.f32 %v376_v15, %v346_v34  ;;  %v310_v40 = vadd.f32 %v309_v36, %v83_v11  ;;  %v311_v41 = vpop.f32.mrb[5].mxu0  ;;  %v335_v42 = vpop.f32.mrb[5].mxu1  ;;  %v334_v2 = vadd.f32 %v333_v37, %v103_v43  ;;  %v418_v22 = vmul.f32 %v396_v12, %v354_v9 }
 0x121   :  { %v411_v45 = vmul.f32 %v376_v15, %v347_v35  ;;  %v312_v46 = vadd.f32 %v311_v41, %v83_v11  ;;  %v336_v7 = vadd.f32 %v335_v42, %v103_v43  ;;  %v419_v27 = vmul.f32 %v396_v12, %v355_v14  ;;  %v406_v32 = vpop.permute.xlu1 %405 }
 0x122   :  { %v424_v49 = vadd.f32 %v410_v39, %v408_v38  ;;  %v348_v50 = vmax.f32 %v310_v40, 0.0  ;;  %v356_v19 = vmax.f32 %v334_v2, 0.0 }
 0x123   :  { %v437_v52 = vadd.f32 %v411_v45, %v409_v44  ;;  %v349_v53 = vmax.f32 %v312_v46, 0.0  ;;  %v315_v54 = vpop.f32.mrb[6].mxu0  ;;  %v339_v55 = vpop.f32.mrb[6].mxu1  ;;  %v357_v20 = vmax.f32 %v336_v7, 0.0  ;;  %v673_v46 = vmov 1966171168  }
 0x124   :  { %v412_v57 = vmul.f32 %v381_v17, %v348_v50  ;;  %v316_v58 = vadd.f32 %v315_v54, %v88_v13  ;;  %v317_v59 = vpop.f32.mrb[7].mxu0  ;;  %v341_v60 = vpop.f32.mrb[7].mxu1  ;;  %v340_v11 = vadd.f32 %v339_v55, %v108_v5  ;;  %v420_v30 = vmul.f32 %v401_v26, %v356_v19 }
 0x125   :  { %v413_v62 = vmul.f32 %v381_v17, %v349_v53  ;;  %v318_v63 = vadd.f32 %v317_v59, %v88_v13  ;;  %v342_v16 = vadd.f32 %v341_v60, %v108_v5  ;;  %v417_v13 = vmul.f32 %v391_v47, %v353_v6 }
 0x126   :  { %v425_v1 = vadd.f32 %v424_v49, %v412_v57  ;;  %v350_v3 = vmax.f32 %v316_v58, 0.0  ;;  %v358_v24 = vmax.f32 %v340_v11, 0.0  ;;  %v421_v33 = vmul.f32 %v401_v26, %v357_v20 }
 0x127   :  { %v438_v4 = vadd.f32 %v437_v52, %v413_v62  ;;  %v351_v8 = vmax.f32 %v318_v63, 0.0  ;;  %v359_v29 = vmax.f32 %v342_v16, 0.0  ;;  %v458_v47 = vunpack.c.l.s4 %v673_v46 }
 0x128   :  { %v414_v10 = vmul.f32 %v386_v25, %v350_v3  ;;  %v451_v53 = vstv %s986_s4  ;;  %v461_v55 = vshrl.u32 %v460_v48, 7 }
 0x129   :  { %v415_v15 = vmul.f32 %v386_v25, %v351_v8  ;;  %v422_v25 = vmul.f32 %v406_v32, %v358_v24  ;;  %v423_v36 = vmul.f32 %v406_v32, %v359_v29  ;;  %v459_v54 = vunpack.c.0.s8 %v458_v47 }
 0x12a   :  { %v426_v17 = vadd.f32 %v425_v1, %v414_v10 }
 0x12b   :  { %v439_v21 = vadd.f32 %v438_v4, %v415_v15  ;;  %v462_v60 = vsub.s32 %v459_v54, %v461_v55 }
 0x12c   :  { %v427_v23 = vadd.f32 %v426_v17, %v416_v18 }
 0x12d   :  { %v440_v28 = vadd.f32 %v439_v21, %v417_v13 }
 0x12e   :  { %v428_v31 = vadd.f32 %v427_v23, %v418_v22 }
 0x12f   :  { %v441_v34 = vadd.f32 %v440_v28, %v419_v27 }
 0x130   :  { %v429_v35 = vadd.f32 %v428_v31, %v420_v30 }
 0x131   :  { %v442_v37 = vadd.f32 %v441_v34, %v421_v33 }
 0x132   :  { %v430_v38 = vadd.f32 %v429_v35, %v422_v25 }
 0x133   :  { %v443_v39 = vadd.f32 %v442_v37, %v423_v36 }
 0x134   :  { %v431_v40 = vrot.slane %v430_v38, 4 }
 0x135   :  { %v444_v41 = vrot.slane %v443_v39, 4 }
 0x136   :  { %v432_v42 = vadd.f32 %v431_v40, %v430_v38 }
 0x137   :  { %v445_v43 = vadd.f32 %v444_v41, %v443_v39 }
 0x138   :  { %v433_v44 = vrot.slane %v432_v42, 2 }
 0x139   :  { %v446_v45 = vrot.slane %v445_v43, 2 }
 0x13a   :  { %v434_v49 = vadd.f32 %v433_v44, %v432_v42 }
 0x13b   :  { %v447_v50 = vadd.f32 %v446_v45, %v445_v43 }
 0x13c   :  { %v435_v51 = vrot.slane %v434_v49, 1 }
 0x13d   :  { %v448_v52 = vrot.slane %v447_v50, 1 }
 0x13e   :  { %v436_v56 = vadd.f32 %v435_v51, %v434_v49 }
 0x13f   :  { %v449_v57 = vadd.f32 %v448_v52, %v447_v50 }
 0x140   :  { %v452_v58 = vadd.f32 %v451_v53, %v436_v56 }
 0x141   :  { %v453_v59 = vadd.f32 %v451_v53, %v449_v57 }
 0x143   :  { %v456_v61 = vcombine.low %v452_v58, %v453_v59 }
 0x145   :  { %v463_v62 = vrot.slane %v456_v61, %v462_v60 }
 0x147   :  { %v470_v63 = vrot.slane %v463_v62, %v462_v60 }
 0x149   :  { %476 = vst.msk [vmem:[#allocation3] sm:$0x3] %vm474_vm2, %v470_v63 }
 0x14a   :  { %659 = shalt.err (!%p656_p4)
}
 0x14b   :  { %s660_s6 = scalar_lea.hbm %s987_s5, 32 }
 0x14c   :  { %p661_p5 = scmp.ne.s32.totalorder %s987_s5, %s660_s6  ;;  %p664_p6 = scmp.lt.u32.totalorder %s660_s6, %s987_s5 }
 0x14e   :  { %p666_p7 = pnand %p664_p6, %p661_p5 }
 0x150   :  { %669 = shalt.err (!%p666_p7)
}
 0x151   :  { %486 = dma.vmem_to_hbm [thread:$0]  %s484_s28, 32, %s987_s5, [#allocation4]  }
 0x152   :  { %670 = dma.done.wait [#allocation4], 32  }
 0x153   :  { %671 = vsyncadd [#allocation4], 4294967264 }
 0x154   :  { %490 = vsyncpa [#allocation4], 1 }

</bundles_post_ra>
